<compile_context>
chip_gen: v7x
topology: tpu7x:2x2x1
jax: 0.10.0
libtpu: 0.0.40
codegen_flags: <defaults>
</compile_context>

<pallas_src>
import functools

import jax
import jax.numpy as jnp
from jax.experimental import pallas as pl
from jax.experimental.pallas import tpu as pltpu

_LANE = 128


def _round_up(x: int, m: int) -> int:
    return ((x + m - 1) // m) * m


def _fcq_fused_kernel(x_ref, w_ref, b_ref, o_ref, *, n_obs: int, n_actions: int):
    """Whole MLP on one batch tile; activation stays a VMEM-resident value.

    x_ref: (tb, n_obs)        streamed input tile (unpadded lanes)
    w_ref: (L+2, F, F)        stacked lane-padded weights (compute dtype, e.g. bf16)
    b_ref: (L+2, 1, F)        stacked lane-padded biases, f32
    o_ref: (tb, n_actions)    output tile (only the real action lanes)
    """
    n_lin = w_ref.shape[0]
    feat = w_ref.shape[2]
    tb = x_ref.shape[0]
    cdtype = w_ref.dtype

    # Zero-extend the (tb, n_obs) input to a full 128-lane slab in VMEM
    # (padded weight rows are zero, so the math stays exact).
    x = x_ref[...]                                                   # (tb, n_obs) f32
    if feat > n_obs:
        x = jnp.concatenate(
            [x, jnp.zeros((tb, feat - n_obs), x.dtype)], axis=-1)    # (tb, F)
    h = x.astype(cdtype)

    # Static unroll over fc1 + hidden layers + out (num_layers is small/static).
    for i in range(n_lin):
        y = jnp.dot(h, w_ref[i], preferred_element_type=jnp.float32)  # MXU, f32 acc
        y = y + b_ref[i]                                              # (1, F) f32 bias
        if i + 1 < n_lin:
            h = jnp.maximum(y, 0.0).astype(cdtype)                    # ReLU -> MXU dtype
        else:
            h = y                                                     # out layer: no ReLU

    # Only the real action lanes touch HBM (masked lane-narrow store).
    o_ref[...] = h[:, :n_actions].astype(o_ref.dtype)


def init_fcq_params(key, dim, num_layers, n_observations=4, n_actions=2,
                    weight_dtype=jnp.bfloat16):
    """Matches FCQ._init_weights: W ~ N(0, 0.02), b = 0.

    Weights are pre-transposed to (in, out), zero-padded to 128 lanes on both
    feature axes, pre-cast to `weight_dtype` (bf16 default = native MXU path)
    and stacked into a single (num_layers+2, F, F) array.  Raw f32 copies are
    kept for reference checks.
    """
    feat = _round_up(max(dim, n_observations, n_actions), _LANE)
    n_lin = num_layers + 2

    def padded(w):
        out = jnp.zeros((feat, feat), jnp.float32)
        return out.at[: w.shape[0], : w.shape[1]].set(w)

    shapes = ([(n_observations, dim)]
              + [(dim, dim)] * num_layers
              + [(dim, n_actions)])
    keys = jax.random.split(key, n_lin)
    raw = [0.02 * jax.random.normal(k, s, jnp.float32) for k, s in zip(keys, shapes)]

    w_stack = jnp.stack([padded(w) for w in raw]).astype(weight_dtype)  # (n_lin, F, F)
    b_stack = jnp.zeros((n_lin, 1, feat), jnp.float32)                  # (n_lin, 1, F)

    return {
        "n_observations": n_observations,
        "n_actions": n_actions,
        "w_stack": w_stack,
        "b_stack": b_stack,
        "raw_weights": raw,
    }


def fcq_forward(params, x, *, batch_tile=1024):
    """Mirror of FCQ.forward: x (B, n_obs) f32 -> (B, n_actions) f32.

    batch_tile: rows streamed per grid step for large batches (512-2048 all
    sit near the HBM roofline; default 1024).
    """
    n_obs = params["n_observations"]
    n_actions = params["n_actions"]
    w_stack = params["w_stack"]
    b_stack = params["b_stack"]
    n_lin, _, feat = w_stack.shape

    x = jnp.asarray(x, jnp.float32)
    if x.ndim == 1:                 # FCQ._format: single state -> add batch dim
        x = x[None, :]
    B = x.shape[0]

    # --- batch tile selection -------------------------------------------
    b8 = _round_up(max(B, 1), 8)
    if b8 > 2 * batch_tile:
        tb = batch_tile                       # large batch: stream big tiles
    elif b8 > 8:
        tb = _round_up(pl.cdiv(b8, 2), 8)     # >=2 grid steps -> both v7x TCs busy
    else:
        tb = b8                               # tiny batch: single step
    n_steps = pl.cdiv(B, tb)                  # ragged tail -> partial last block

    # Explicit VMEM budget: double-buffered streamed/pinned blocks + live
    # activation values, with headroom (clamped to v7x's 64 MiB physical VMEM).
    est = 2 * (tb * n_obs * 4 + tb * n_actions * 4               # x / out tiles
               + w_stack.size * w_stack.dtype.itemsize           # pinned weights
               + b_stack.size * 4)                               # pinned biases
    est += 4 * tb * feat * 4 + (4 << 20)                         # live h/y + headroom
    vmem_limit = int(min(max(est, 16 << 20), 64 << 20))

    kernel = functools.partial(_fcq_fused_kernel, n_obs=n_obs, n_actions=n_actions)

    return pl.pallas_call(
        kernel,
        out_shape=jax.ShapeDtypeStruct((B, n_actions), jnp.float32),
        grid_spec=pl.GridSpec(
            grid=(n_steps,),
            in_specs=[
                # streamed input tiles (last dim == full array dim -> legal block)
                pl.BlockSpec((tb, n_obs), lambda i: (i, 0)),
                # weights/biases pinned in VMEM (constant index_map)
                pl.BlockSpec((n_lin, feat, feat), lambda i: (0, 0, 0)),
                pl.BlockSpec((n_lin, 1, feat), lambda i: (0, 0, 0)),
            ],
            # lane-narrow output: only real action lanes are ever written to HBM
            out_specs=pl.BlockSpec((tb, n_actions), lambda i: (i, 0)),
        ),
        compiler_params=pltpu.CompilerParams(
            dimension_semantics=("parallel",),
            vmem_limit_bytes=vmem_limit,
        ),
    )(x, w_stack, b_stack)


if __name__ == "__main__":
    # Small shapes consistent with the module: batch=8 observations of size 4,
    # hidden dim=32, 2 hidden layers, 2 actions.
    B, N_OBS, DIM, NUM_LAYERS, N_ACTIONS = 8, 4, 32, 2, 2

    key = jax.random.PRNGKey(0)
    key, kx = jax.random.split(key)
    x = jax.random.normal(kx, (B, N_OBS), jnp.float32)

    # Default (bf16 weights, MXU-native) path.
    params = init_fcq_params(key, DIM, NUM_LAYERS,
                             n_observations=N_OBS, n_actions=N_ACTIONS)
    q_values = fcq_forward(params, x)
    jax.block_until_ready(q_values)

    # Plain-JAX f32 reference on the raw (unpadded) weights — same math as
    # FCQ.forward (biases are zero at init).
    raw = params["raw_weights"]
    ref = x
    for w in raw[:-1]:
        ref = jnp.maximum(ref @ w, 0.0)
    ref = ref @ raw[-1]

    assert q_values.shape == (B, N_ACTIONS)
    # bf16 weights / bf16 MXU operands (f32 accumulation) vs. the f32 reference.
    assert jnp.allclose(q_values, ref, atol=2e-5, rtol=1e-1), (
        float(jnp.max(jnp.abs(q_values - ref))))

    # Full-precision (f32 weights) instance of the same kernel: tight check.
    params_f32 = init_fcq_params(key, DIM, NUM_LAYERS,
                                 n_observations=N_OBS, n_actions=N_ACTIONS,
                                 weight_dtype=jnp.float32)
    q_f32 = fcq_forward(params_f32, x)
    jax.block_until_ready(q_f32)
    assert jnp.allclose(q_f32, ref, atol=1e-6, rtol=1e-4), (
        float(jnp.max(jnp.abs(q_f32 - ref))))

    print("KERNEL_OK")
</pallas_src>

<mosaic_0001>
module attributes {stable_mosaic.version = 11 : i64} {
  func.func @_fcq_fused_kernel(%arg0: i32, %arg1: memref<8x4xf32, #tpu.memory_space<vmem>>, %arg2: memref<4x128x128xbf16, #tpu.memory_space<vmem>>, %arg3: memref<4x1x128xf32, #tpu.memory_space<vmem>>, %arg4: memref<8x2xf32, #tpu.memory_space<vmem>>) attributes {dimension_semantics = [#tpu.dimension_semantics<parallel>], iteration_bounds = array<i64: 1>, scalar_prefetch = 0 : i64, scratch_operands = 0 : i64, tpu.core_type = #tpu.core_type<tc>, window_params = [{transform_indices = @transform_0, window_bounds = array<i64: 8, 4>}, {pipeline_mode = #tpu.pipeline_mode<synchronous>, transform_indices = @transform_1, window_bounds = array<i64: 4, 128, 128>}, {pipeline_mode = #tpu.pipeline_mode<synchronous>, transform_indices = @transform_2, window_bounds = array<i64: 4, 1, 128>}, {transform_indices = @transform_3, window_bounds = array<i64: 8, 2>}]} {
    %c0 = arith.constant 0 : index
    %c0_0 = arith.constant 0 : index
    %0 = vector.load %arg1[%c0, %c0_0] : memref<8x4xf32, #tpu.memory_space<vmem>>, vector<8x4xf32>
    %cst = arith.constant 0.000000e+00 : f32
    %1 = vector.broadcast %cst : f32 to vector<8x124xf32>
    %2 = tpu.concatenate %0, %1 in 1 : vector<8x4xf32>, vector<8x124xf32> -> vector<8x128xf32>
    %3 = arith.truncf %2 : vector<8x128xf32> to vector<8x128xbf16>
    %c0_1 = arith.constant 0 : index
    %c0_2 = arith.constant 0 : index
    %c0_3 = arith.constant 0 : index
    %4 = vector.load %arg2[%c0_1, %c0_2, %c0_3] : memref<4x128x128xbf16, #tpu.memory_space<vmem>>, vector<1x128x128xbf16>
    %5 = vector.shape_cast %4 : vector<1x128x128xbf16> to vector<128x128xbf16>
    %cst_4 = arith.constant dense<0.000000e+00> : vector<8x128xf32>
    %6 = tpu.matmul %3, %5, %cst_4 {dimension_numbers = #tpu.dot_dimension_numbers<[1], [0], [0], [1], [0, 0, 1, 1], [], []>} : vector<8x128xbf16>, vector<128x128xbf16>, vector<8x128xf32> -> vector<8x128xf32>
    %c0_5 = arith.constant 0 : index
    %c0_6 = arith.constant 0 : index
    %c0_7 = arith.constant 0 : index
    %7 = vector.load %arg3[%c0_5, %c0_6, %c0_7] : memref<4x1x128xf32, #tpu.memory_space<vmem>>, vector<1x1x128xf32>
    %8 = vector.shape_cast %7 : vector<1x1x128xf32> to vector<1x128xf32>
    %9 = vector.broadcast %8 : vector<1x128xf32> to vector<8x128xf32>
    %10 = arith.addf %6, %9 : vector<8x128xf32>
    %cst_8 = arith.constant 0.000000e+00 : f32
    %11 = vector.broadcast %cst_8 : f32 to vector<8x128xf32>
    %12 = arith.maximumf %10, %11 : vector<8x128xf32>
    %13 = arith.truncf %12 : vector<8x128xf32> to vector<8x128xbf16>
    %c1 = arith.constant 1 : index
    %c0_9 = arith.constant 0 : index
    %c0_10 = arith.constant 0 : index
    %14 = vector.load %arg2[%c1, %c0_9, %c0_10] : memref<4x128x128xbf16, #tpu.memory_space<vmem>>, vector<1x128x128xbf16>
    %15 = vector.shape_cast %14 : vector<1x128x128xbf16> to vector<128x128xbf16>
    %cst_11 = arith.constant dense<0.000000e+00> : vector<8x128xf32>
    %16 = tpu.matmul %13, %15, %cst_11 {dimension_numbers = #tpu.dot_dimension_numbers<[1], [0], [0], [1], [0, 0, 1, 1], [], []>} : vector<8x128xbf16>, vector<128x128xbf16>, vector<8x128xf32> -> vector<8x128xf32>
    %c1_12 = arith.constant 1 : index
    %c0_13 = arith.constant 0 : index
    %c0_14 = arith.constant 0 : index
    %17 = vector.load %arg3[%c1_12, %c0_13, %c0_14] : memref<4x1x128xf32, #tpu.memory_space<vmem>>, vector<1x1x128xf32>
    %18 = vector.shape_cast %17 : vector<1x1x128xf32> to vector<1x128xf32>
    %19 = vector.broadcast %18 : vector<1x128xf32> to vector<8x128xf32>
    %20 = arith.addf %16, %19 : vector<8x128xf32>
    %cst_15 = arith.constant 0.000000e+00 : f32
    %21 = vector.broadcast %cst_15 : f32 to vector<8x128xf32>
    %22 = arith.maximumf %20, %21 : vector<8x128xf32>
    %23 = arith.truncf %22 : vector<8x128xf32> to vector<8x128xbf16>
    %c2 = arith.constant 2 : index
    %c0_16 = arith.constant 0 : index
    %c0_17 = arith.constant 0 : index
    %24 = vector.load %arg2[%c2, %c0_16, %c0_17] : memref<4x128x128xbf16, #tpu.memory_space<vmem>>, vector<1x128x128xbf16>
    %25 = vector.shape_cast %24 : vector<1x128x128xbf16> to vector<128x128xbf16>
    %cst_18 = arith.constant dense<0.000000e+00> : vector<8x128xf32>
    %26 = tpu.matmul %23, %25, %cst_18 {dimension_numbers = #tpu.dot_dimension_numbers<[1], [0], [0], [1], [0, 0, 1, 1], [], []>} : vector<8x128xbf16>, vector<128x128xbf16>, vector<8x128xf32> -> vector<8x128xf32>
    %c2_19 = arith.constant 2 : index
    %c0_20 = arith.constant 0 : index
    %c0_21 = arith.constant 0 : index
    %27 = vector.load %arg3[%c2_19, %c0_20, %c0_21] : memref<4x1x128xf32, #tpu.memory_space<vmem>>, vector<1x1x128xf32>
    %28 = vector.shape_cast %27 : vector<1x1x128xf32> to vector<1x128xf32>
    %29 = vector.broadcast %28 : vector<1x128xf32> to vector<8x128xf32>
    %30 = arith.addf %26, %29 : vector<8x128xf32>
    %cst_22 = arith.constant 0.000000e+00 : f32
    %31 = vector.broadcast %cst_22 : f32 to vector<8x128xf32>
    %32 = arith.maximumf %30, %31 : vector<8x128xf32>
    %33 = arith.truncf %32 : vector<8x128xf32> to vector<8x128xbf16>
    %c3 = arith.constant 3 : index
    %c0_23 = arith.constant 0 : index
    %c0_24 = arith.constant 0 : index
    %34 = vector.load %arg2[%c3, %c0_23, %c0_24] : memref<4x128x128xbf16, #tpu.memory_space<vmem>>, vector<1x128x128xbf16>
    %35 = vector.shape_cast %34 : vector<1x128x128xbf16> to vector<128x128xbf16>
    %cst_25 = arith.constant dense<0.000000e+00> : vector<8x128xf32>
    %36 = tpu.matmul %33, %35, %cst_25 {dimension_numbers = #tpu.dot_dimension_numbers<[1], [0], [0], [1], [0, 0, 1, 1], [], []>} : vector<8x128xbf16>, vector<128x128xbf16>, vector<8x128xf32> -> vector<8x128xf32>
    %c3_26 = arith.constant 3 : index
    %c0_27 = arith.constant 0 : index
    %c0_28 = arith.constant 0 : index
    %37 = vector.load %arg3[%c3_26, %c0_27, %c0_28] : memref<4x1x128xf32, #tpu.memory_space<vmem>>, vector<1x1x128xf32>
    %38 = vector.shape_cast %37 : vector<1x1x128xf32> to vector<1x128xf32>
    %39 = vector.broadcast %38 : vector<1x128xf32> to vector<8x128xf32>
    %40 = arith.addf %36, %39 : vector<8x128xf32>
    %41 = vector.extract_strided_slice %40 {offsets = [0, 0], sizes = [8, 2], strides = [1, 1]} : vector<8x128xf32> to vector<8x2xf32>
    %c0_29 = arith.constant 0 : index
    %c0_30 = arith.constant 0 : index
    %42 = vector.load %arg4[%c0_29, %c0_30] : memref<8x2xf32, #tpu.memory_space<vmem>>, vector<8x2xf32>
    tpu.vector_store %arg4[%c0_29, %c0_30], %41 {strides = array<i32>} : memref<8x2xf32, #tpu.memory_space<vmem>>, vector<8x2xf32>,
    return
  }
  func.func @transform_0(%arg0: i32) -> (i32, i32) {
    %c0_i32 = arith.constant 0 : i32
    %c0_i32_0 = arith.constant 0 : i32
    return %arg0, %c0_i32 : i32, i32
  }
  func.func @transform_1(%arg0: i32) -> (i32, i32, i32) {
    %c0_i32 = arith.constant 0 : i32
    %c0_i32_0 = arith.constant 0 : i32
    %c0_i32_1 = arith.constant 0 : i32
    %c0_i32_2 = arith.constant 0 : i32
    return %c0_i32, %c0_i32_0, %c0_i32_1 : i32, i32, i32
  }
  func.func @transform_2(%arg0: i32) -> (i32, i32, i32) {
    %c0_i32 = arith.constant 0 : i32
    %c0_i32_0 = arith.constant 0 : i32
    %c0_i32_1 = arith.constant 0 : i32
    %c0_i32_2 = arith.constant 0 : i32
    return %c0_i32, %c0_i32_0, %c0_i32_1 : i32, i32, i32
  }
  func.func @transform_3(%arg0: i32) -> (i32, i32) {
    %c0_i32 = arith.constant 0 : i32
    %c0_i32_0 = arith.constant 0 : i32
    return %arg0, %c0_i32 : i32, i32
  }
}

</mosaic_0001>

<bundles_post_ra>
// kernel: tpu_custom_call.1
= control target key start
LH: loop header
LB: loop body
LE: loop exit
PB: predicated region body
PF: predicated region fallthrough
CT: control target
= control target key end

     0   :  { %8 = vsyncpa [#allocation3], 0  ;;  %s715_s12 = smov [#allocation2]   ;;  %s810_s0 = inlined_call_operand.vmem [shape: f32[8,4], index: 0, kind: input, shape index: {}]   ;;  %s811_s1 = inlined_call_operand.hbm [shape: bf16[4,128,128], index: 1, kind: input, shape index: {}]   ;;  %s812_s2 = inlined_call_operand.vmem [shape: f32[4,1,128], index: 2, kind: input, shape index: {}]   ;;  %s813_s3 = inlined_call_operand.vmem [shape: f32[8,2], index: 3, kind: output, shape index: {}]  }
   0x1   :  { %s16_s13 = sshll.u32 %s715_s12, 4  ;;  %s691_s16 = scalar_lea.hbm %s811_s1, 4096  ;;  %s17_s13 = int_to_ptr.vmem [resolvable:$true] %s16_s13 }
   0x2   :  { %p692_p0 = scmp.ne.s32.totalorder %s811_s1, %s691_s16  ;;  %p695_p1 = scmp.lt.u32.totalorder %s691_s16, %s811_s1 }
   0x4   :  { %p697_p2 = pnand %p695_p1, %p692_p0 }
   0x6   :  { %700 = shalt.err (!%p697_p2)
}
   0x7   :  { %s701_s21 = scalar_lea.vmem %s17_s13, 4096  ;;  %p706_p4 = scmp.lt.s32.totalorder %s17_s13, %s17_s13 }
   0x8   :  { %p702_p3 = scmp.ne.s32.totalorder %s17_s13, %s701_s21  ;;  %p707_p5 = scmp.lt.s32.totalorder %s701_s21, %s701_s21 }
   0xa   :  { %p708_p6 = por %p707_p5, %p706_p4 }
   0xc   :  { %p709_p7 = pnand %p708_p6, %p702_p3 }
   0xe   :  { %712 = shalt.err (!%p709_p7)
}
   0xf   :  { %s716_s22 = smov 64   ;;  %s717_s23 = smov 4  }
  0x10   :  { %22 = dma.hbm_to_vmem [thread:$0]  %s811_s1, 4096, %s17_s13, [#allocation3], %s716_s22, %s716_s22, %s717_s23  }
  0x11   :  { %713 = dma.done.wait [#allocation3], 4096  }
  0x12   :  { %714 = vsyncadd [#allocation3], 4294963200  ;;  %v718_v0 = vmov 0.0   ;;  %vm719_vm0 = vmmov 0   ;;  %v659_v1 = vld [vmem:[#allocation2] sm:$0xff]   ;;  %v660_v2 = vld [vmem:[#allocation2 + $0x8] sm:$0xff]  }
  0x13   :  { %574 = vmatprep.subr.bf16.mxu0 %v718_v0  ;;  %590 = vmatprep.mubr.msk.bf16.mxu0 %vm719_vm0, %v718_v0  ;;  %v661_v3 = vld [vmem:[#allocation2 + $0x10] sm:$0xff]   ;;  %v667_v4 = vld [vmem:[#allocation2 + $0x40] sm:$0xff]   ;;  %v662_v5 = vld [vmem:[#allocation2 + $0x18] sm:$0xff]   ;;  %vm30_vm1 = vcmask 31744   ;;  %vm489_vm3 = vcmask 15360  }
  0x14   :  { %594 = vmatprep.subr.bf16.mxu1 %v718_v0  ;;  %610 = vmatprep.mubr.msk.bf16.mxu1 %vm719_vm0, %v718_v0  ;;  %v668_v6 = vld [vmem:[#allocation2 + $0x48] sm:$0xff]   ;;  %v663_v7 = vld [vmem:[#allocation2 + $0x20] sm:$0xff]   ;;  %v669_v8 = vld [vmem:[#allocation2 + $0x50] sm:$0xff]  }
  0x15   :  { %575 = vmatpush3.bf16.msra.mxu0 %v659_v1  ;;  %595 = vmatpush3.bf16.msra.mxu1 %v667_v4  ;;  %v664_v9 = vld [vmem:[#allocation2 + $0x28] sm:$0xff]   ;;  %v670_v10 = vld [vmem:[#allocation2 + $0x58] sm:$0xff]   ;;  %v665_v11 = vld [vmem:[#allocation2 + $0x30] sm:$0xff]  }
  0x16   :  { %576 = vmatprep.subr.bf16.mxu0 %v718_v0  ;;  %596 = vmatprep.subr.bf16.mxu1 %v718_v0  ;;  %v671_v12 = vld [vmem:[#allocation2 + $0x60] sm:$0xff]   ;;  %v666_v13 = vld [vmem:[#allocation2 + $0x38] sm:$0xff]   ;;  %v672_v15 = vld [vmem:[#allocation2 + $0x68] sm:$0xff]  }
  0x17   :  { %v29_v14 = vld [vmem:[%s810_s0] sm:$0xff]  ;;  %vm505_vm2 = vmpackc.low %vm30_vm1, %vm30_vm1  ;;  %v673_v17 = vld [vmem:[#allocation2 + $0x70] sm:$0xff]  }
  0x18   :  { %v506_v16 = vpack.c.bf16 %v29_v14, %v29_v14  ;;  %v674_v18 = vld [vmem:[#allocation2 + $0x78] sm:$0xff]   ;;  %v675_v19 = vld [vmem:[#allocation2 + $0x80] sm:$0xff]   ;;  %v676_v20 = vld [vmem:[#allocation2 + $0x88] sm:$0xff]  }
  0x19   :  { %577 = vmatpush3.bf16.msra.mxu0 %v660_v2  ;;  %597 = vmatpush3.bf16.msra.mxu1 %v668_v6  ;;  %v677_v21 = vld [vmem:[#allocation2 + $0x90] sm:$0xff]   ;;  %v678_v22 = vld [vmem:[#allocation2 + $0x98] sm:$0xff]   ;;  %v679_v23 = vld [vmem:[#allocation2 + $0xa0] sm:$0xff]  }
  0x1a   :  { %578 = vmatprep.subr.bf16.mxu0 %v718_v0  ;;  %598 = vmatprep.subr.bf16.mxu1 %v718_v0  ;;  %v680_v24 = vld [vmem:[#allocation2 + $0xa8] sm:$0xff]   ;;  %v496_v25 = vld [vmem:[%s812_s2] ss:$0 sm:$0xff]  ;;  %v681_v33 = vld [vmem:[#allocation2 + $0xb0] sm:$0xff]  }
  0x1b   :  { %v682_v34 = vld [vmem:[#allocation2 + $0xb8] sm:$0xff]   ;;  %v683_v35 = vld [vmem:[#allocation2 + $0xc0] sm:$0xff]   ;;  %v684_v36 = vld [vmem:[#allocation2 + $0xc8] sm:$0xff]  }
  0x1c   :  { %v685_v37 = vld [vmem:[#allocation2 + $0xd0] sm:$0xff]   ;;  %v686_v38 = vld [vmem:[#allocation2 + $0xd8] sm:$0xff]   ;;  %v687_v39 = vld [vmem:[#allocation2 + $0xe0] sm:$0xff]  }
  0x1d   :  { %579 = vmatpush3.bf16.msra.mxu0 %v661_v3  ;;  %599 = vmatpush3.bf16.msra.mxu1 %v669_v8  ;;  %v688_v40 = vld [vmem:[#allocation2 + $0xe8] sm:$0xff]   ;;  %v509_v41 = vld [vmem:[%s812_s2 + $0x1] ss:$0 sm:$0xff]  ;;  %v689_v49 = vld [vmem:[#allocation2 + $0xf0] sm:$0xff]  }
  0x1e   :  { %580 = vmatprep.subr.bf16.mxu0 %v718_v0  ;;  %600 = vmatprep.subr.bf16.mxu1 %v718_v0  ;;  %v690_v50 = vld [vmem:[#allocation2 + $0xf8] sm:$0xff]   ;;  %v519_v51 = vld [vmem:[%s812_s2 + $0x2] ss:$0 sm:$0xff]  ;;  %v529_v59 = vld [vmem:[%s812_s2 + $0x3] ss:$0 sm:$0xff] }
  0x21   :  { %581 = vmatpush3.bf16.msra.mxu0 %v662_v5  ;;  %601 = vmatpush3.bf16.msra.mxu1 %v670_v10 }
  0x22   :  { %582 = vmatprep.subr.bf16.mxu0 %v718_v0  ;;  %602 = vmatprep.subr.bf16.mxu1 %v718_v0 }
  0x25   :  { %583 = vmatpush3.bf16.msra.mxu0 %v663_v7  ;;  %603 = vmatpush3.bf16.msra.mxu1 %v671_v12 }
  0x26   :  { %584 = vmatprep.subr.bf16.mxu0 %v718_v0  ;;  %604 = vmatprep.subr.bf16.mxu1 %v718_v0 }
  0x29   :  { %585 = vmatpush3.bf16.msra.mxu0 %v664_v9  ;;  %605 = vmatpush3.bf16.msra.mxu1 %v672_v15 }
  0x2a   :  { %586 = vmatprep.subr.bf16.mxu0 %v718_v0  ;;  %606 = vmatprep.subr.bf16.mxu1 %v718_v0 }
  0x2d   :  { %587 = vmatpush3.bf16.msra.mxu0 %v665_v11  ;;  %607 = vmatpush3.bf16.msra.mxu1 %v673_v17 }
  0x2e   :  { %588 = vmatprep.subr.bf16.mxu0 %v718_v0  ;;  %608 = vmatprep.subr.bf16.mxu1 %v718_v0 }
  0x31   :  { %589 = vmatpush3.bf16.msra.mxu0 %v666_v13  ;;  %609 = vmatpush3.bf16.msra.mxu1 %v674_v18 }
  0x32   :  { %614 = vmatprep.subr.bf16.mxu0 %v718_v0  ;;  %634 = vmatprep.subr.bf16.mxu1 %v718_v0 }
  0x34   :  { %591 = vmatmul.mubr.msk.bf16.vlgmr.msra.gmra.mrb[0].mxu0 %vm505_vm2, %v506_v16 }
  0x35   :  { %630 = vmatprep.mubr.msk.bf16.mxu0 %vm719_vm0, %v718_v0  ;;  %615 = vmatpush3.bf16.msra.mxu0 %v675_v19 }
  0x36   :  { %616 = vmatprep.subr.bf16.mxu0 %v718_v0 }
  0x39   :  { %617 = vmatpush3.bf16.msra.mxu0 %v676_v20 }
  0x3a   :  { %618 = vmatprep.subr.bf16.mxu0 %v718_v0 }
  0x3d   :  { %619 = vmatpush3.bf16.msra.mxu0 %v677_v21 }
  0x3e   :  { %620 = vmatprep.subr.bf16.mxu0 %v718_v0 }
  0x41   :  { %621 = vmatpush3.bf16.msra.mxu0 %v678_v22 }
  0x42   :  { %622 = vmatprep.subr.bf16.mxu0 %v718_v0 }
  0x45   :  { %623 = vmatpush3.bf16.msra.mxu0 %v679_v23 }
  0x46   :  { %624 = vmatprep.subr.bf16.mxu0 %v718_v0 }
  0x49   :  { %625 = vmatpush3.bf16.msra.mxu0 %v680_v24 }
  0x4a   :  { %626 = vmatprep.subr.bf16.mxu0 %v718_v0 }
  0x4d   :  { %627 = vmatpush3.bf16.msra.mxu0 %v681_v33 }
  0x4e   :  { %628 = vmatprep.subr.bf16.mxu0 %v718_v0 }
  0x51   :  { %629 = vmatpush3.bf16.msra.mxu0 %v682_v34 }
 0x107   :  { %v138_v26 = vpop.f32.mrb[0].mxu0 }
 0x108   :  { %v139_v27 = vadd.f32 %v496_v25, %v138_v26  ;;  %v592_v28 = vpop.f32.mrb[1].mxu0 }
 0x109   :  { %v141_v29 = vpop.f32.mrb[2].mxu0 }
 0x10a   :  { %v144_v30 = vmax.f32 %v139_v27, 0.0  ;;  %v593_v31 = vpop.f32.mrb[3].mxu0 }
 0x10c   :  { %v145_v32 = vpack.c.bf16 %v144_v30, %v144_v30 }
 0x10e   :  { %611 = vmatmul.mubr.bf16.vlgmr.msra.gmra.mrb[0].mxu1 %v145_v32 }
 0x10f   :  { %650 = vmatprep.mubr.msk.bf16.mxu1 %vm719_vm0, %v718_v0  ;;  %635 = vmatpush3.bf16.msra.mxu1 %v683_v35 }
 0x110   :  { %636 = vmatprep.subr.bf16.mxu1 %v718_v0 }
 0x113   :  { %637 = vmatpush3.bf16.msra.mxu1 %v684_v36 }
 0x114   :  { %638 = vmatprep.subr.bf16.mxu1 %v718_v0 }
 0x117   :  { %639 = vmatpush3.bf16.msra.mxu1 %v685_v37 }
 0x118   :  { %640 = vmatprep.subr.bf16.mxu1 %v718_v0 }
 0x11b   :  { %641 = vmatpush3.bf16.msra.mxu1 %v686_v38 }
 0x11c   :  { %642 = vmatprep.subr.bf16.mxu1 %v718_v0 }
 0x11f   :  { %643 = vmatpush3.bf16.msra.mxu1 %v687_v39 }
 0x120   :  { %644 = vmatprep.subr.bf16.mxu1 %v718_v0 }
 0x123   :  { %645 = vmatpush3.bf16.msra.mxu1 %v688_v40 }
 0x124   :  { %646 = vmatprep.subr.bf16.mxu1 %v718_v0 }
 0x127   :  { %647 = vmatpush3.bf16.msra.mxu1 %v689_v49 }
 0x128   :  { %648 = vmatprep.subr.bf16.mxu1 %v718_v0 }
 0x12b   :  { %649 = vmatpush3.bf16.msra.mxu1 %v690_v50 }
 0x1e1   :  { %v253_v42 = vpop.f32.mrb[0].mxu1 }
 0x1e2   :  { %v254_v43 = vadd.f32 %v509_v41, %v253_v42  ;;  %v612_v44 = vpop.f32.mrb[1].mxu1 }
 0x1e3   :  { %v256_v45 = vpop.f32.mrb[2].mxu1 }
 0x1e4   :  { %v259_v46 = vmax.f32 %v254_v43, 0.0  ;;  %v613_v47 = vpop.f32.mrb[3].mxu1 }
 0x1e6   :  { %v260_v48 = vpack.c.bf16 %v259_v46, %v259_v46 }
 0x1e8   :  { %631 = vmatmul.mubr.bf16.vlgmr.msra.gmra.mrb[4].mxu0 %v260_v48 }
 0x2bb   :  { %v368_v52 = vpop.f32.mrb[4].mxu0 }
 0x2bc   :  { %v369_v53 = vadd.f32 %v519_v51, %v368_v52  ;;  %v632_v54 = vpop.f32.mrb[5].mxu0 }
 0x2bd   :  { %v371_v55 = vpop.f32.mrb[6].mxu0 }
 0x2be   :  { %v374_v56 = vmax.f32 %v369_v53, 0.0  ;;  %v633_v57 = vpop.f32.mrb[7].mxu0 }
 0x2c0   :  { %v375_v58 = vpack.c.bf16 %v374_v56, %v374_v56 }
 0x2c2   :  { %651 = vmatmul.mubr.bf16.vlgmr.msra.gmra.mrb[4].mxu1 %v375_v58 }
 0x395   :  { %v483_v60 = vpop.f32.mrb[4].mxu1 }
 0x396   :  { %v484_v61 = vadd.f32 %v529_v59, %v483_v60  ;;  %v652_v62 = vpop.f32.mrb[5].mxu1 }
 0x397   :  { %v486_v63 = vpop.f32.mrb[6].mxu1 }
 0x398   :  { %490 = vst.msk [vmem:[%s813_s3] sm:$0xff] %vm489_vm3, %v484_v61  ;;  %v653_v0 = vpop.f32.mrb[7].mxu1 }
 0x399   :  { %495 = vsyncpa [#allocation3], 1 }

</bundles_post_ra>
